<compile_context>
chip_gen: v5e
topology: v5e:2x2
jax: 0.10.0
libtpu: 0.0.40
codegen_flags: <defaults>
</compile_context>

<pallas_src>
import jax
import jax.numpy as jnp
from jax.experimental import pallas as pl
from jax.experimental.pallas import tpu as pltpu

NUM_HEADS = 5
HEAD_NAMES = ("main", "L", "R", "cdir", "btn")
HEAD_OUT_DIMS = (2, 1, 1, 5, 12)
HEAD_ACTS = (1, 2, 2, 0, 0)      # 0 = identity, 1 = tanh, 2 = sigmoid
OUT_PAD = 128                    # lane-dense packed output width (one lane tile)

# Column offset of each head inside the packed [B, OUT_PAD] output slab.
_offs, _acc = [], 0
for _d in HEAD_OUT_DIMS:
    _offs.append(_acc)
    _acc += _d
COL_OFFS = tuple(_offs)
TOTAL_OUT = _acc                 # 21 valid columns

# Static lane runs per activation (used to build iota masks at trace time).
_TANH_RUNS = tuple((off, off + dim) for off, dim, code
                   in zip(COL_OFFS, HEAD_OUT_DIMS, HEAD_ACTS) if code == 1)
_SIG_RUNS = tuple((off, off + dim) for off, dim, code
                  in zip(COL_OFFS, HEAD_OUT_DIMS, HEAD_ACTS) if code == 2)


def _lane_mask(lane, runs):
    m = jnp.zeros(lane.shape, dtype=jnp.bool_)
    for lo, hi in runs:
        m = m | ((lane >= lo) & (lane < hi))
    return m


def _heads_kernel(h_ref, w1_ref, b1_ref, w2_ref, b2_ref, out_ref, probs_ref):
    # In-kernel bf16 cast of the activation operand (VPU op, hidden under launch).
    h_bf = h_ref[...].astype(jnp.bfloat16)

    # Layer 1, all heads fused along lanes: (B, D) @ (D, 384) -> (B, 384), f32 acc.
    z = jnp.dot(h_bf, w1_ref[...], preferred_element_type=jnp.float32)
    z = jnp.maximum(z + b1_ref[...], 0.0)

    # Layer 2, block-diagonal packed weights: (B, 384) @ (384, 128) -> (B, 128).
    logits = jnp.dot(z.astype(w2_ref.dtype), w2_ref[...],
                     preferred_element_type=jnp.float32) + b2_ref[...]

    # Full-slab activations (each one EUP pass over a single vreg-wide slab),
    # static per-lane selection, and exactly one lane-dense store per output.
    tanh_slab = jnp.tanh(logits)
    sig_slab = jax.nn.sigmoid(logits)
    lane = jax.lax.broadcasted_iota(jnp.int32, logits.shape, 1)
    out = jnp.where(_lane_mask(lane, _TANH_RUNS), tanh_slab,
                    jnp.where(_lane_mask(lane, _SIG_RUNS), sig_slab, logits))

    out_ref[...] = out.astype(out_ref.dtype)
    # Fused downstream sigmoid: probs slab (cdir / btn probs sliced in wrapper).
    probs_ref[...] = sig_slab.astype(probs_ref.dtype)


def init_params(key, d_model, hidden=64):
    """PyTorch-Linear-style init (U(-1/sqrt(fan_in), 1/sqrt(fan_in))) per head.

    Returns both the per-head f32 params (for the pure-JAX reference) and the
    packed bf16/f32 params consumed by the kernel.
    """
    ks = jax.random.split(key, 4 * NUM_HEADS)
    per_head = []
    for hidx, out_dim in enumerate(HEAD_OUT_DIMS):
        k1, k2, k3, k4 = ks[4 * hidx: 4 * hidx + 4]
        lim1 = 1.0 / jnp.sqrt(d_model)
        lim2 = 1.0 / jnp.sqrt(hidden)
        w1 = jax.random.uniform(k1, (d_model, hidden), jnp.float32, -lim1, lim1)
        b1 = jax.random.uniform(k2, (1, hidden), jnp.float32, -lim1, lim1)
        w2 = jax.random.uniform(k3, (hidden, out_dim), jnp.float32, -lim2, lim2)
        b2 = jax.random.uniform(k4, (1, out_dim), jnp.float32, -lim2, lim2)
        per_head.append((w1, b1, w2, b2))

    # ---- pack for the fused single-shot kernel ----
    hid_total = NUM_HEADS * hidden                       # 320
    hid_pad = ((hid_total + 127) // 128) * 128           # 384 = 3 lane tiles
    w1p = jnp.zeros((d_model, hid_pad), jnp.float32)
    b1p = jnp.zeros((1, hid_pad), jnp.float32)
    w2p = jnp.zeros((hid_pad, OUT_PAD), jnp.float32)     # block-diagonal
    b2p = jnp.zeros((1, OUT_PAD), jnp.float32)
    for hidx, (off, out_dim) in enumerate(zip(COL_OFFS, HEAD_OUT_DIMS)):
        w1, b1, w2, b2 = per_head[hidx]
        c0, c1 = hidx * hidden, (hidx + 1) * hidden
        w1p = w1p.at[:, c0:c1].set(w1)
        b1p = b1p.at[:, c0:c1].set(b1)
        w2p = w2p.at[c0:c1, off:off + out_dim].set(w2)
        b2p = b2p.at[:, off:off + out_dim].set(b2)

    packed = (w1p.astype(jnp.bfloat16), b1p, w2p.astype(jnp.bfloat16), b2p)
    return {"packed": packed, "per_head": per_head}


def prediction_heads_forward(h, params):
    w1p, b1p, w2p, b2p = params["packed"]
    B = h.shape[0]

    # TODO(synk): if B grows to many sublane tiles on v7x, add a batch grid
    # (block (Bt, .), dimension_semantics=("parallel",)) to use both TensorCores.
    out, probs = pl.pallas_call(
        _heads_kernel,
        out_shape=(jax.ShapeDtypeStruct((B, OUT_PAD), jnp.float32),
                   jax.ShapeDtypeStruct((B, OUT_PAD), jnp.float32)),
        in_specs=[pl.BlockSpec(memory_space=pltpu.MemorySpace.VMEM)] * 5,
        out_specs=[pl.BlockSpec(memory_space=pltpu.MemorySpace.VMEM)] * 2,
    )(h, w1p, b1p, w2p, b2p)

    sliced = {name: out[:, off:off + dim]
              for name, off, dim in zip(HEAD_NAMES, COL_OFFS, HEAD_OUT_DIMS)}
    cdir_off, cdir_dim = COL_OFFS[3], HEAD_OUT_DIMS[3]
    btn_off, btn_dim = COL_OFFS[4], HEAD_OUT_DIMS[4]
    return dict(
        main_xy=sliced["main"],
        L_val=sliced["L"],
        R_val=sliced["R"],
        c_dir_logits=sliced["cdir"],
        c_dir_probs=probs[:, cdir_off:cdir_off + cdir_dim],
        btn_logits=sliced["btn"],
        btn_probs=probs[:, btn_off:btn_off + btn_dim],
    )


def threshold_buttons(btn_probs, btn_threshold=0.5):
    return btn_probs >= btn_threshold


def _reference_forward(h, params):
    """Pure-JAX per-head reference, independent of the packed/block-diagonal layout.

    Applies the same bf16 rounding of MXU operands as the kernel (f32 accumulation),
    so differences reduce to accumulation order.
    """
    hf = h.astype(jnp.bfloat16).astype(jnp.float32)
    outs = []
    for (w1, b1, w2, b2), code in zip(params["per_head"], HEAD_ACTS):
        w1f = w1.astype(jnp.bfloat16).astype(jnp.float32)
        w2f = w2.astype(jnp.bfloat16).astype(jnp.float32)
        z = jnp.maximum(jnp.dot(hf, w1f, precision=jax.lax.Precision.HIGHEST) + b1, 0.0)
        zb = z.astype(jnp.bfloat16).astype(jnp.float32)
        logits = jnp.dot(zb, w2f, precision=jax.lax.Precision.HIGHEST) + b2
        if code == 1:
            y = jnp.tanh(logits)
        elif code == 2:
            y = jax.nn.sigmoid(logits)
        else:
            y = logits
        outs.append(y)
    return outs


if __name__ == "__main__":
    B, D_MODEL, HIDDEN = 8, 32, 64
    key = jax.random.PRNGKey(0)
    k_param, k_h = jax.random.split(key)
    params = init_params(k_param, D_MODEL, HIDDEN)
    h = jax.random.normal(k_h, (B, D_MODEL), jnp.float32)

    out = prediction_heads_forward(h, params)
    jax.block_until_ready(out)

    # Sanity check against the pure-JAX per-head reference (catches packing bugs).
    ref = _reference_forward(h, params)
    got = [out["main_xy"], out["L_val"], out["R_val"], out["c_dir_logits"], out["btn_logits"]]
    for name, r, g in zip(HEAD_NAMES, ref, got):
        assert r.shape == g.shape, f"shape mismatch in head {name}"
        assert jnp.allclose(r, g, atol=2e-3, rtol=2e-3), f"mismatch vs reference in head {name}"
    # Fused prob outputs must match sigmoid of the reference logits.
    assert jnp.allclose(out["c_dir_probs"], jax.nn.sigmoid(ref[3]), atol=2e-3, rtol=2e-3)
    assert jnp.allclose(out["btn_probs"], jax.nn.sigmoid(ref[4]), atol=2e-3, rtol=2e-3)

    _ = threshold_buttons(out["btn_probs"])
    print("KERNEL_OK")
</pallas_src>

<mosaic_0001>
module attributes {stable_mosaic.version = 11 : i64} {
  func.func @_heads_kernel(%arg0: memref<8x32xf32, #tpu.memory_space<vmem>>, %arg1: memref<32x384xbf16, #tpu.memory_space<vmem>>, %arg2: memref<1x384xf32, #tpu.memory_space<vmem>>, %arg3: memref<384x128xbf16, #tpu.memory_space<vmem>>, %arg4: memref<1x128xf32, #tpu.memory_space<vmem>>, %arg5: memref<8x128xf32, #tpu.memory_space<vmem>>, %arg6: memref<8x128xf32, #tpu.memory_space<vmem>>) attributes {dimension_semantics = [], scalar_prefetch = 0 : i64, scratch_operands = 0 : i64, tpu.core_type = #tpu.core_type<tc>} {
    %c0 = arith.constant 0 : index
    %c0_0 = arith.constant 0 : index
    %0 = vector.load %arg0[%c0, %c0_0] : memref<8x32xf32, #tpu.memory_space<vmem>>, vector<8x32xf32>
    %1 = arith.truncf %0 : vector<8x32xf32> to vector<8x32xbf16>
    %c0_1 = arith.constant 0 : index
    %c0_2 = arith.constant 0 : index
    %2 = vector.load %arg1[%c0_1, %c0_2] : memref<32x384xbf16, #tpu.memory_space<vmem>>, vector<32x384xbf16>
    %cst = arith.constant dense<0.000000e+00> : vector<8x384xf32>
    %3 = tpu.matmul %1, %2, %cst {dimension_numbers = #tpu.dot_dimension_numbers<[1], [0], [0], [1], [0, 0, 1, 1], [], []>} : vector<8x32xbf16>, vector<32x384xbf16>, vector<8x384xf32> -> vector<8x384xf32>
    %c0_3 = arith.constant 0 : index
    %c0_4 = arith.constant 0 : index
    %4 = vector.load %arg2[%c0_3, %c0_4] : memref<1x384xf32, #tpu.memory_space<vmem>>, vector<1x384xf32>
    %5 = vector.broadcast %4 : vector<1x384xf32> to vector<8x384xf32>
    %6 = arith.addf %3, %5 : vector<8x384xf32>
    %cst_5 = arith.constant 0.000000e+00 : f32
    %7 = vector.broadcast %cst_5 : f32 to vector<8x384xf32>
    %8 = arith.maximumf %6, %7 : vector<8x384xf32>
    %9 = arith.truncf %8 : vector<8x384xf32> to vector<8x384xbf16>
    %c0_6 = arith.constant 0 : index
    %c0_7 = arith.constant 0 : index
    %10 = vector.load %arg3[%c0_6, %c0_7] : memref<384x128xbf16, #tpu.memory_space<vmem>>, vector<384x128xbf16>
    %cst_8 = arith.constant dense<0.000000e+00> : vector<8x128xf32>
    %11 = tpu.matmul %9, %10, %cst_8 {dimension_numbers = #tpu.dot_dimension_numbers<[1], [0], [0], [1], [0, 0, 1, 1], [], []>} : vector<8x384xbf16>, vector<384x128xbf16>, vector<8x128xf32> -> vector<8x128xf32>
    %c0_9 = arith.constant 0 : index
    %c0_10 = arith.constant 0 : index
    %12 = vector.load %arg4[%c0_9, %c0_10] : memref<1x128xf32, #tpu.memory_space<vmem>>, vector<1x128xf32>
    %13 = vector.broadcast %12 : vector<1x128xf32> to vector<8x128xf32>
    %14 = arith.addf %11, %13 : vector<8x128xf32>
    %15 = math.tanh %14 : vector<8x128xf32>
    %16 = arith.negf %14 : vector<8x128xf32>
    %17 = math.exp %16 : vector<8x128xf32>
    %cst_11 = arith.constant 1.000000e+00 : f32
    %18 = vector.broadcast %cst_11 : f32 to vector<8x128xf32>
    %19 = arith.addf %18, %17 : vector<8x128xf32>
    %20 = arith.divf %18, %19 : vector<8x128xf32>
    %21 = tpu.iota {dimensions = array<i32: 1>} : vector<8x128xi32>
    %false = arith.constant false
    %22 = vector.broadcast %false : i1 to vector<8x128xi1>
    %c0_i32 = arith.constant 0 : i32
    %23 = vector.broadcast %c0_i32 : i32 to vector<8x128xi32>
    %24 = arith.cmpi sge, %21, %23 : vector<8x128xi32>
    %c2_i32 = arith.constant 2 : i32
    %25 = vector.broadcast %c2_i32 : i32 to vector<8x128xi32>
    %26 = arith.cmpi slt, %21, %25 : vector<8x128xi32>
    %27 = arith.andi %24, %26 : vector<8x128xi1>
    %28 = arith.ori %22, %27 : vector<8x128xi1>
    %false_12 = arith.constant false
    %29 = vector.broadcast %false_12 : i1 to vector<8x128xi1>
    %c2_i32_13 = arith.constant 2 : i32
    %30 = vector.broadcast %c2_i32_13 : i32 to vector<8x128xi32>
    %31 = arith.cmpi sge, %21, %30 : vector<8x128xi32>
    %c3_i32 = arith.constant 3 : i32
    %32 = vector.broadcast %c3_i32 : i32 to vector<8x128xi32>
    %33 = arith.cmpi slt, %21, %32 : vector<8x128xi32>
    %34 = arith.andi %31, %33 : vector<8x128xi1>
    %35 = arith.ori %29, %34 : vector<8x128xi1>
    %c3_i32_14 = arith.constant 3 : i32
    %36 = vector.broadcast %c3_i32_14 : i32 to vector<8x128xi32>
    %37 = arith.cmpi sge, %21, %36 : vector<8x128xi32>
    %c4_i32 = arith.constant 4 : i32
    %38 = vector.broadcast %c4_i32 : i32 to vector<8x128xi32>
    %39 = arith.cmpi slt, %21, %38 : vector<8x128xi32>
    %40 = arith.andi %37, %39 : vector<8x128xi1>
    %41 = arith.ori %35, %40 : vector<8x128xi1>
    %42 = arith.select %41, %20, %14 : vector<8x128xi1>, vector<8x128xf32>
    %43 = arith.select %28, %15, %42 : vector<8x128xi1>, vector<8x128xf32>
    %c0_15 = arith.constant 0 : index
    %c0_16 = arith.constant 0 : index
    %44 = vector.load %arg5[%c0_15, %c0_16] : memref<8x128xf32, #tpu.memory_space<vmem>>, vector<8x128xf32>
    tpu.vector_store %arg5[%c0_15, %c0_16], %43 {strides = array<i32>} : memref<8x128xf32, #tpu.memory_space<vmem>>, vector<8x128xf32>,
    %c0_17 = arith.constant 0 : index
    %c0_18 = arith.constant 0 : index
    %45 = vector.load %arg6[%c0_17, %c0_18] : memref<8x128xf32, #tpu.memory_space<vmem>>, vector<8x128xf32>
    tpu.vector_store %arg6[%c0_17, %c0_18], %20 {strides = array<i32>} : memref<8x128xf32, #tpu.memory_space<vmem>>, vector<8x128xf32>,
    return
  }
}

</mosaic_0001>

<bundles_post_ra>
// kernel: tpu_custom_call.1
= control target key start
LH: loop header
LB: loop body
LE: loop exit
PB: predicated region body
PF: predicated region fallthrough
CT: control target
= control target key end

     0   :  { %12 = vsyncpa [#allocation3], 0  ;;  %s895_s0 = inlined_call_operand.hbm [shape: f32[8,32], index: 0, kind: input, shape index: {}]   ;;  %s896_s1 = inlined_call_operand.hbm [shape: bf16[32,384], index: 1, kind: input, shape index: {}]   ;;  %s897_s2 = inlined_call_operand.hbm [shape: f32[1,384], index: 2, kind: input, shape index: {}]   ;;  %s898_s3 = inlined_call_operand.hbm [shape: bf16[384,128], index: 3, kind: input, shape index: {}]   ;;  %s899_s4 = inlined_call_operand.vmem [shape: f32[1,128], index: 4, kind: input, shape index: {}]   ;;  %s900_s5 = inlined_call_operand.hbm [shape: f32[8,128], index: 5, kind: output, shape index: {0}]   ;;  %s901_s6 = inlined_call_operand.hbm [shape: f32[8,128], index: 6, kind: output, shape index: {1}]  }
   0x1   :  { %13 = vsyncpa [#allocation6], 0 }
   0x2   :  { %14 = vsyncpa [#allocation9], 0 }
   0x3   :  { %15 = vsyncpa [#allocation4], 0  ;;  %s32_s23 = sshll.u32 %s896_s1, 4  ;;  %s33_s23 = int_to_ptr.hbm [resolvable:$true] %s32_s23 }
   0x4   :  { %16 = vsyncpa [#allocation12], 0  ;;  %s814_s24 = smov [#allocation5]   ;;  %s22_s28 = sshll.u32 %s895_s0, 4  ;;  %s23_s28 = int_to_ptr.hbm [resolvable:$true] %s22_s28 }
   0x5   :  { %s34_s25 = sshll.u32 %s814_s24, 4  ;;  %s815_s29 = smov 192   ;;  %s35_s25 = int_to_ptr.vmem [resolvable:$true] %s34_s25 }
   0x6   :  { %s816_s30 = smov 12   ;;  %s817_s7 = smov [#allocation2]  }
   0x7   :  { %40 = dma.hbm_to_vmem [thread:$0]  %s33_s23, 768, %s35_s25, [#allocation6], %s815_s29, %s815_s29, %s816_s30  }
   0x8   :  { %s24_s8 = sshll.u32 %s817_s7, 4  ;;  %s46_s11 = sshll.u32 %s897_s2, 4  ;;  %s25_s8 = int_to_ptr.vmem [resolvable:$true] %s24_s8  ;;  %s47_s11 = int_to_ptr.hbm [resolvable:$true] %s46_s11 }
   0x9   :  { %27 = dma.hbm_to_vmem [thread:$0]  %s23_s28, 128, %s25_s8, [#allocation3]  }
   0xa   :  { %s56_s13 = sshll.u32 %s898_s3, 4  ;;  %s818_s14 = smov [#allocation7]   ;;  %s57_s13 = int_to_ptr.hbm [resolvable:$true] %s56_s13 }
   0xb   :  { %s48_s15 = sshll.u32 %s818_s14, 4  ;;  %s819_s0 = smov [#allocation8]   ;;  %s49_s15 = int_to_ptr.vmem [resolvable:$true] %s48_s15 }
   0xc   :  { %51 = dma.hbm_to_vmem [thread:$0]  %s47_s11, 48, %s49_s15, [#allocation6]  }
   0xd   :  { %s58_s16 = sshll.u32 %s819_s0, 4  ;;  %s820_s17 = smov 64   ;;  %s59_s16 = int_to_ptr.vmem [resolvable:$true] %s58_s16 }
   0xe   :  { %s821_s18 = smov 4  }
   0xf   :  { %64 = dma.hbm_to_vmem [thread:$0]  %s57_s13, 3072, %s59_s16, [#allocation9], %s820_s17, %s820_s17, %s821_s18  }
  0x10   :  { %804 = dma.done.wait [#allocation3], 128  }
  0x11   :  { %805 = vsyncadd [#allocation3], 4294967168 }
  0x12   :  { %806 = dma.done.wait [#allocation6], 816  }
  0x13   :  { %807 = vsyncadd [#allocation6], 4294966480 }
  0x14   :  { %808 = dma.done.wait [#allocation9], 3072  }
  0x15   :  { %809 = vsyncadd [#allocation9], 4294964224  ;;  %v503_v0 = vld [vmem:[#allocation5 + $0x18] sm:$0xf]  ;;  %v617_v1 = vld [vmem:[#allocation5 + $0x20] sm:$0xf0] }
  0x16   :  { %v491_v2 = vld [vmem:[#allocation5] sm:$0xf]  ;;  %v504_v3 = vor.u32 %v617_v1, %v503_v0  ;;  %v614_v4 = vld [vmem:[#allocation5 + $0x8] sm:$0xf0]  ;;  %v616_v7 = vld [vmem:[#allocation5 + $0x1c] sm:$0xf] }
  0x17   :  { %v511_v5 = vld [vmem:[#allocation5 + $0x20] sm:$0xf]  ;;  %v618_v6 = vld [vmem:[#allocation5 + $0x28] sm:$0xf0]  ;;  %v505_v8 = vld [vmem:[#allocation5 + $0x24] sm:$0xf0]  ;;  %v492_v9 = vor.u32 %v614_v4, %v491_v2 }
  0x18   :  { %144 = vmatpush.bf16.msra.mxu2 %v504_v3  ;;  %v84_v10 = vld [vmem:[#allocation2] sm:$0xff]  ;;  %v508_v11 = vor.u32 %v616_v7, %v505_v8  ;;  %v613_v12 = vld [vmem:[#allocation5 + $0x4] sm:$0xf]  ;;  %v512_v13 = vor.u32 %v618_v6, %v511_v5  ;;  %v493_v14 = vld [vmem:[#allocation5 + $0xc] sm:$0xf0]  ;;  %vm134_vm0 = vcmask 261120  }
  0x19   :  { %v626_v15 = vld [vmem:[#allocation8 + $0x38] sm:$0xff]  ;;  %v499_v16 = vld [vmem:[#allocation5 + $0x8] sm:$0xf]  ;;  %v615_v17 = vld [vmem:[#allocation5 + $0x10] sm:$0xf0]  ;;  %v496_v18 = vor.u32 %v613_v12, %v493_v14  ;;  %v85_v20 = vpack.c.bf16 %v84_v10, %v84_v10  ;;  %v438_v12 = vlaneseq  ;;  %s472_s22 = sshll.u32 %s901_s6, 4  ;;  %s473_s22 = int_to_ptr.hbm [resolvable:$true] %s472_s22 }
  0x1a   :  { %157 = vmatpush.bf16.msra.mxu1 %v508_v11  ;;  %v634_v19 = vld [vmem:[#allocation8 + $0x78] sm:$0xff]  ;;  %379 = vmatpush.bf16.msra.mxu3 %v626_v15  ;;  %v625_v21 = vld [vmem:[#allocation8 + $0x30] sm:$0xff]  ;;  %v500_v24 = vor.u32 %v615_v17, %v499_v16  ;;  %v624_v25 = vld [vmem:[#allocation8 + $0x28] sm:$0xff]  ;;  %s823_s23 = smov [#allocation10]   ;;  %s461_s27 = sshll.u32 %s900_s5, 4  ;;  %s462_s27 = int_to_ptr.hbm [resolvable:$true] %s461_s27 }
  0x1b   :  { %392 = vmatpush.bf16.msra.mxu0 %v634_v19  ;;  %v633_v22 = vld [vmem:[#allocation8 + $0x70] sm:$0xff]  ;;  %v642_v23 = vld [vmem:[#allocation8 + $0xb8] sm:$0xff]  ;;  %v632_v26 = vld [vmem:[#allocation8 + $0x68] sm:$0xff]  ;;  %s459_s24 = sshll.u32 %s823_s23, 4  ;;  %s460_s24 = int_to_ptr.vmem [resolvable:$true] %s459_s24 }
  0x1c   :  { %145 = vmatpush.bf16.msra.mxu2 %v492_v9  ;;  %v641_v27 = vld [vmem:[#allocation8 + $0xb0] sm:$0xff]  ;;  %v623_v28 = vld [vmem:[#allocation8 + $0x20] sm:$0xff]  ;;  %v622_v30 = vld [vmem:[#allocation8 + $0x18] sm:$0xff] }
  0x1d   :  { %v631_v29 = vld [vmem:[#allocation8 + $0x60] sm:$0xff]  ;;  %v630_v31 = vld [vmem:[#allocation8 + $0x58] sm:$0xff]  ;;  %v621_v32 = vld [vmem:[#allocation8 + $0x10] sm:$0xff] }
  0x1e   :  { %158 = vmatpush.bf16.msra.mxu1 %v496_v18  ;;  %380 = vmatpush.bf16.msra.mxu3 %v625_v21  ;;  %v620_v33 = vld [vmem:[#allocation8 + $0x8] sm:$0xff]  ;;  %v629_v35 = vld [vmem:[#allocation8 + $0x50] sm:$0xff]  ;;  %v619_v36 = vld [vmem:[#allocation8] sm:$0xff] }
  0x1f   :  { %513 = vmatmul.msk.bf16.vlgmr.msra.gmra.mxu2 %vm134_vm0, %v85_v20  ;;  %393 = vmatpush.bf16.msra.mxu0 %v633_v22  ;;  %v640_v34 = vld [vmem:[#allocation8 + $0xa8] sm:$0xff]  ;;  %v639_v37 = vld [vmem:[#allocation8 + $0xa0] sm:$0xff]  ;;  %v638_v39 = vld [vmem:[#allocation8 + $0x98] sm:$0xff] }
  0x20   :  { %170 = vmatpush.bf16.msrb.mxu2 %v512_v13  ;;  %v628_v38 = vld [vmem:[#allocation8 + $0x48] sm:$0xff]  ;;  %v627_v40 = vld [vmem:[#allocation8 + $0x40] sm:$0xff]  ;;  %v637_v41 = vld [vmem:[#allocation8 + $0x90] sm:$0xff]  ;;  %v439_v13 = vand.u32 127, %v438_v12 }
  0x21   :  { %514 = vmatmul.msk.bf16.vlgmr.msra.gmra.mxu1 %vm134_vm0, %v85_v20  ;;  %v636_v42 = vld [vmem:[#allocation8 + $0x88] sm:$0xff]  ;;  %v635_v43 = vld [vmem:[#allocation8 + $0x80] sm:$0xff]  ;;  %v94_v44 = vld [vmem:[#allocation7] sm:$0x7] }
  0x22   :  { %405 = vmatpush.bf16.msrb.mxu1 %v642_v23  ;;  %381 = vmatpush.bf16.msra.mxu3 %v624_v25  ;;  %v97_v45 = vperm.slane %v94_v44, 1  ;;  %v96_v47 = vperm.slane %v94_v44, 0  ;;  %v98_v57 = vperm.slane %v94_v44, 2  ;;  %v653_v2 = vld [vmem:[%s899_s4] ss:$0 sm:$0xff]  ;;  %vm443_vm1 = vcmp.ge.s32.totalorder %v439_v13, 2 }
  0x23   :  { %394 = vmatpush.bf16.msra.mxu0 %v632_v26  ;;  %vm444_vm2 = vcmp.lt.s32.totalorder %v439_v13, 3  ;;  %vm446_vm3 = vcmp.ge.s32.totalorder %v439_v13, 3  ;;  %vm447_vm4 = vcmp.lt.s32.totalorder %v439_v13, 4  ;;  %s822_s4 = smov [#allocation11]   ;;  %vm441_vm12 = vcmp.lt.s32.totalorder %v439_v13, 2 }
  0x24   :  { %171 = vmatpush.bf16.msrb.mxu2 %v500_v24  ;;  %vm877_vm5 = vmand %vm443_vm1, %vm444_vm2  ;;  %s470_s19 = sshll.u32 %s822_s4, 4  ;;  %s471_s19 = int_to_ptr.vmem [resolvable:$true] %s470_s19 }
  0x25   :  { %vm881_vm6 = vmand %vm446_vm3, %vm447_vm4 }
  0x26   :  { %406 = vmatpush.bf16.msrb.mxu1 %v641_v27  ;;  %382 = vmatpush.bf16.msra.mxu3 %v623_v28  ;;  %vm449_vm9 = vmor %vm877_vm5, %vm881_vm6 }
  0x27   :  { %395 = vmatpush.bf16.msra.mxu0 %v631_v29 }
  0x2a   :  { %383 = vmatpush.bf16.msra.mxu3 %v622_v30  ;;  %407 = vmatpush.bf16.msrb.mxu1 %v640_v34 }
  0x2b   :  { %396 = vmatpush.bf16.msra.mxu0 %v630_v31 }
  0x2e   :  { %384 = vmatpush.bf16.msra.mxu3 %v621_v32  ;;  %408 = vmatpush.bf16.msrb.mxu1 %v639_v37 }
  0x2f   :  { %515 = vmatmul.msk.bf16.vlgmr.msrb.gmra.mxu2 %vm134_vm0, %v85_v20  ;;  %397 = vmatpush.bf16.msra.mxu0 %v629_v35 }
  0x32   :  { %385 = vmatpush.bf16.msra.mxu3 %v620_v33  ;;  %409 = vmatpush.bf16.msrb.mxu1 %v638_v39 }
  0x33   :  { %398 = vmatpush.bf16.msra.mxu0 %v628_v38 }
  0x36   :  { %386 = vmatpush.bf16.msra.mxu3 %v619_v36  ;;  %410 = vmatpush.bf16.msrb.mxu1 %v637_v41 }
  0x37   :  { %399 = vmatpush.bf16.msra.mxu0 %v627_v40 }
  0x3a   :  { %411 = vmatpush.bf16.msrb.mxu1 %v636_v42 }
  0x3e   :  { %412 = vmatpush.bf16.msrb.mxu1 %v635_v43 }
  0x9e   :  { %v160_v46 = vpop.f32.mrf.mxu1 }
  0x9f   :  { %v161_v48 = vadd.f32 %v160_v46, %v97_v45 }
  0xa1   :  { %v178_v49 = vmax.f32 %v161_v48, 0.0 }
  0xa2   :  { %v147_v50 = vpop.f32.mrf.mxu2 }
  0xa3   :  { %v148_v51 = vadd.f32 %v147_v50, %v96_v47  ;;  %v181_v52 = vpack.c.bf16 %v178_v49, %v178_v49 }
  0xa5   :  { %v177_v53 = vmax.f32 %v148_v51, 0.0  ;;  %400 = vmatmul.bf16.vlgmr.msra.gmra.mxu0 %v181_v52 }
  0xa6   :  { %v162_v54 = vpop.f32.mrf.mxu1 }
  0xa7   :  { %v180_v55 = vpack.c.bf16 %v177_v53, %v177_v53 }
  0xa9   :  { %387 = vmatmul.bf16.vlgmr.msra.gmra.mxu3 %v180_v55 }
  0xaa   :  { %v149_v56 = vpop.f32.mrf.mxu2 }
  0xb2   :  { %v173_v58 = vpop.f32.mrf.mxu2 }
  0xb3   :  { %v174_v59 = vadd.f32 %v173_v58, %v98_v57 }
  0xb5   :  { %v179_v60 = vmax.f32 %v174_v59, 0.0 }
  0xb7   :  { %v182_v61 = vpack.c.bf16 %v179_v60, %v179_v60 }
  0xb9   :  { %413 = vmatmul.bf16.vlgmr.msrb.gmra.mxu1 %v182_v61 }
  0xba   :  { %v175_v62 = vpop.f32.mrf.mxu2 }
 0x122   :  { %v401_v63 = vpop.f32.mrf.mxu0 }
 0x12a   :  { %v403_v0 = vpop.f32.mrf.mxu0 }
 0x12c   :  { %v388_v1 = vpop.f32.mrf.mxu3 }
 0x12d   :  { %v389_v3 = vadd.f32 %v653_v2, %v388_v1 }
 0x12f   :  { %v402_v5 = vadd.f32 %v401_v63, %v389_v3 }
 0x134   :  { %v390_v4 = vpop.f32.mrf.mxu3 }
 0x136   :  { %v414_v6 = vpop.f32.mrf.mxu1 }
 0x137   :  { %v415_v7 = vadd.f32 %v414_v6, %v402_v5 }
 0x139   :  { %v612_v8 = vmul.f32 -1.442695, %v415_v7 }
 0x13b   :  { %654 = vpow2.f32 %v612_v8 }
 0x13e   :  { %v416_v9 = vpop.f32.mrf.mxu1 }
 0x141   :  { %v655_v10 = vpop.eup %654 }
 0x142   :  { %v422_v11 = vadd.f32 1.0, %v655_v10 }
 0x144   :  { %656 = vrcp.f32 %v422_v11  ;;  %v434_v18 = vand.u32 2147483648, %v422_v11  ;;  %v432_v21 = vand.u32 2147483647, %v422_v11  ;;  %vm428_vm8 = vweird.f32 %v422_v11 }
 0x145   :  { %658 = vtanh.f32 %v415_v7 }
 0x146   :  { %v435_v23 = vor.u32 1.1754944e-38, %v434_v18  ;;  %vm433_vm11 = vcmp.eq.f32.partialorder %v432_v21, 8.507059e+37 }
 0x14a   :  { %v657_v14 = vpop.eup %656 }
 0x14b   :  { %v424_v15 = vmul.f32 %v657_v14, %v422_v11  ;;  %vm429_vm7 = vweird.f32 %v657_v14  ;;  %v659_v26 = vpop.eup %658 }
 0x14c   :  { %vm430_vm10 = vmor %vm428_vm8, %vm429_vm7 }
 0x14d   :  { %v425_v16 = vsub.f32 1.0, %v424_v15 }
 0x14f   :  { %v426_v20 = vmul.f32 %v657_v14, %v425_v16 }
 0x151   :  { %v427_v22 = vadd.f32 %v657_v14, %v426_v20 }
 0x153   :  { %v431_v24 = vsel %vm430_vm10, %v657_v14, %v427_v22 }
 0x154   :  { %v436_v25 = vsel %vm433_vm11, %v435_v23, %v431_v24 }
 0x155   :  { %v450_v27 = vsel %vm449_vm9, %v436_v25, %v415_v7  ;;  %453 = vst [vmem:[#allocation11] sm:$0xff] %v436_v25 }
 0x156   :  { %v451_v28 = vsel %vm441_vm12, %v659_v26, %v450_v27  ;;  %475 = dma.vmem_to_hbm [thread:$0]  %s471_s19, 128, %s473_s22, [#allocation12]  }
 0x157   :  { %452 = vst [vmem:[#allocation10] sm:$0xff] %v451_v28 }
 0x158   :  { %464 = dma.vmem_to_hbm [thread:$0]  %s460_s24, 128, %s462_s27, [#allocation4]  }
 0x159   :  { %810 = dma.done.wait [#allocation4], 128  }
 0x15a   :  { %811 = vsyncadd [#allocation4], 4294967168 }
 0x15b   :  { %812 = dma.done.wait [#allocation12], 128  }
 0x15c   :  { %813 = vsyncadd [#allocation12], 4294967168 }
 0x15d   :  { %484 = vsyncpa [#allocation3], 1 }
 0x15e   :  { %485 = vsyncpa [#allocation6], 1 }
 0x15f   :  { %486 = vsyncpa [#allocation9], 1 }
 0x160   :  { %487 = vsyncpa [#allocation4], 1 }
 0x161   :  { %488 = vsyncpa [#allocation12], 1 }

</bundles_post_ra>
